<compile_context>
chip_gen: v6e
topology: v6e:2x2x1
jax: 0.10.0
libtpu: 0.0.40
codegen_flags: <defaults>
</compile_context>

<pallas_src>
import functools
import math

import jax
import jax.numpy as jnp
from jax.experimental import pallas as pl
from jax.experimental.pallas import tpu as pltpu

LN_EPS = 1e-12  # BertConfig default layer_norm_eps

# Slots of the packed per-layer (9, H) bias / LayerNorm parameter block.
_BQ, _BK, _BV, _BO, _LN1G, _LN1B, _B2, _LN2G, _LN2B = range(9)


def _layernorm(x, gamma, beta, eps=LN_EPS):
    mean = jnp.mean(x, axis=-1, keepdims=True)
    var = jnp.mean((x - mean) ** 2, axis=-1, keepdims=True)
    return (x - mean) * jax.lax.rsqrt(var + eps) * gamma + beta


def _gelu_tanh(x):
    # tanh-approx GELU: tanh runs on the EUP slot (nearly free next to the MXU)
    # instead of the ~12 VALU ops + exp of the erf polynomial.
    c = math.sqrt(2.0 / math.pi)
    return 0.5 * x * (1.0 + jnp.tanh(c * (x + 0.044715 * x * x * x)))


# ----------------------------------------------------------------------------
# Pallas kernel: one encoder layer step on the (batch_tile, layer) grid.
# The hidden state lives in the resident output block across the layer axis.
# ----------------------------------------------------------------------------
def bert_encoder_kernel(mask_ref, x_ref, wq_ref, wk_ref, wv_ref, wo_ref,
                        w1_ref, w2_ref, bh_ref, bi_ref, out_ref,
                        *, num_heads, head_dim):
    bt, s, hidden = x_ref.shape
    rows = bt * s
    hd = head_dim

    # Layer 0: seed the resident hidden-state block with the embeddings tile.
    @pl.when(pl.program_id(1) == 0)
    def _():
        out_ref[...] = x_ref[...]

    x2 = out_ref[...].reshape(rows, hidden)              # (rows, H) f32 carry
    x_bf = x2.astype(jnp.bfloat16)

    b_all = bh_ref[...]                                  # (9, H) f32
    bq, bk = b_all[_BQ:_BQ + 1], b_all[_BK:_BK + 1]
    bv, bo = b_all[_BV:_BV + 1], b_all[_BO:_BO + 1]
    ln1_g, ln1_b = b_all[_LN1G:_LN1G + 1], b_all[_LN1B:_LN1B + 1]
    ln2_g, ln2_b = b_all[_LN2G:_LN2G + 1], b_all[_LN2B:_LN2B + 1]
    b2 = b_all[_B2:_B2 + 1]
    b1 = bi_ref[...]                                     # (1, I) f32

    # --- Self-attention -----------------------------------------------------
    q = jnp.dot(x_bf, wq_ref[...], preferred_element_type=jnp.float32) + bq
    k = jnp.dot(x_bf, wk_ref[...], preferred_element_type=jnp.float32) + bk
    v = jnp.dot(x_bf, wv_ref[...], preferred_element_type=jnp.float32) + bv
    q = q * (1.0 / math.sqrt(hd))          # fold softmax scale into Q once

    q3 = q.reshape(bt, s, hidden)
    k3 = k.reshape(bt, s, hidden)
    v3 = v.reshape(bt, s, hidden)

    # Head fold: (bt, S, heads*hd) -> (heads*bt, S, hd) so a SINGLE batched
    # einsum (and one batched softmax) covers every head.
    # TODO(synk): replace the slice+concat fold with a direct
    # (bt,S,heads,hd)->(bt,heads,S,hd) relayout once Mosaic lowers non-minor
    # transposes / two-batch-dim dot_general.
    def split_heads(t3):
        return jnp.concatenate(
            [t3[:, :, h * hd:(h + 1) * hd] for h in range(num_heads)], axis=0)

    qh = split_heads(q3).astype(jnp.bfloat16)
    kh = split_heads(k3).astype(jnp.bfloat16)
    vh = split_heads(v3).astype(jnp.bfloat16)

    # Additive mask, hoisted & replicated onto the folded (head-major) batch.
    mask_b = jnp.broadcast_to(mask_ref[...], (bt, s, s))           # f32
    mask_f = (jnp.concatenate([mask_b] * num_heads, axis=0)
              if num_heads > 1 else mask_b)

    scores = jnp.einsum('bqd,bkd->bqk', qh, kh,
                        preferred_element_type=jnp.float32) + mask_f
    scores = scores - jnp.max(scores, axis=-1, keepdims=True)
    probs = jnp.exp(scores)
    denom = jnp.sum(probs, axis=-1, keepdims=True)
    probs = probs * pl.reciprocal(denom, approx=True)              # EUP

    ctx = jnp.einsum('bqk,bkd->bqd', probs.astype(jnp.bfloat16), vh,
                     preferred_element_type=jnp.float32)   # (heads*bt, S, hd)
    ctx = jnp.concatenate(
        [ctx[h * bt:(h + 1) * bt] for h in range(num_heads)], axis=-1)
    ctx2 = ctx.reshape(rows, hidden)

    attn = jnp.dot(ctx2.astype(jnp.bfloat16), wo_ref[...],
                   preferred_element_type=jnp.float32) + bo
    h1 = _layernorm(x2 + attn, ln1_g, ln1_b)

    # --- FFN ----------------------------------------------------------------
    ffn = jnp.dot(h1.astype(jnp.bfloat16), w1_ref[...],
                  preferred_element_type=jnp.float32) + b1
    ffn = _gelu_tanh(ffn)
    ffn = jnp.dot(ffn.astype(jnp.bfloat16), w2_ref[...],
                  preferred_element_type=jnp.float32) + b2
    out = _layernorm(h1 + ffn, ln2_g, ln2_b)

    out_ref[...] = out.reshape(bt, s, hidden)


def _pick_block_b(batch, seq, max_rows, min_grid_steps=1):
    """Largest divisor of `batch` with bt*seq <= max_rows, preferring at least
    `min_grid_steps` batch-grid steps (multi-TensorCore parts)."""
    fitting = [d for d in range(1, batch + 1)
               if batch % d == 0 and d * seq <= max_rows] or [1]
    bt = max(fitting)
    if min_grid_steps > 1:
        multi = [d for d in fitting if batch // d >= min_grid_steps]
        if multi:
            bt = max(multi)
    return bt


def bert_encoder(x, mask_add, enc, num_heads):
    B, S, H = x.shape
    L = enc["wq"].shape[0]
    I = enc["w1"].shape[2]
    head_dim = H // num_heads

    try:
        vmem_cap = int(pltpu.get_tpu_info().vmem_capacity_bytes)
    except Exception:
        vmem_cap = 64 << 20                       # conservative default
    if vmem_cap >= (100 << 20):                   # v5e/v6e: 128 MiB, 1 TC
        max_rows, min_steps = 1024, 1
    else:                                         # v7x-like: 64 MiB, 2 TCs
        max_rows, min_steps = 512, 2
    # TODO(synk): query the TensorCore count directly instead of inferring it
    # from the VMEM capacity.

    bt = _pick_block_b(B, S, max_rows, min_steps)
    grid = (B // bt, L)

    def wspec(shape):
        # Per-layer stacked parameter: indexed by the layer grid coordinate so
        # pipelining prefetches layer l+1's block during layer l's compute.
        return pl.BlockSpec((None,) + shape, lambda b, l: (l, 0, 0))

    in_specs = [
        pl.BlockSpec((bt, 1, S), lambda b, l: (b, 0, 0)),   # additive mask
        pl.BlockSpec((bt, S, H), lambda b, l: (b, 0, 0)),   # embeddings tile
        wspec((H, H)), wspec((H, H)), wspec((H, H)), wspec((H, H)),  # Wq..Wo
        wspec((H, I)), wspec((I, H)),                                # W1, W2
        wspec((9, H)), wspec((1, I)),                                # packed biases/LN
    ]
    out_spec = pl.BlockSpec((bt, S, H), lambda b, l: (b, 0, 0))

    # VMEM estimate: double-buffered bf16 weights (layer l and l+1), f32
    # activation intermediates, resident hidden/output tiles, plus headroom;
    # clamped to 85% of the queried device capacity (v7x = 64 MiB).
    rows, fold = bt * S, num_heads * bt
    layer_bytes = 2 * (4 * H * H + 2 * H * I) + 4 * (9 * H + I)
    act_bytes = 4 * rows * (6 * H + 2 * I) + 4 * fold * S * S * 3
    io_bytes = 4 * bt * S * (4 * H + 2)
    est = 2 * layer_bytes + act_bytes + io_bytes + (8 << 20)
    vmem_limit = int(min(max(est, 32 << 20), (vmem_cap * 85) // 100))

    kernel = functools.partial(bert_encoder_kernel,
                               num_heads=num_heads, head_dim=head_dim)
    return pl.pallas_call(
        kernel,
        grid=grid,
        in_specs=in_specs,
        out_specs=out_spec,
        out_shape=jax.ShapeDtypeStruct((B, S, H), jnp.float32),
        compiler_params=pltpu.CompilerParams(
            dimension_semantics=("parallel", "arbitrary"),
            vmem_limit_bytes=vmem_limit),
    )(mask_add, x,
      enc["wq"], enc["wk"], enc["wv"], enc["wo"],
      enc["w1"], enc["w2"], enc["bvec_h"], enc["bvec_i"])


# ----------------------------------------------------------------------------
# Parameter init (deterministic, synthetic; mirrors module __init__ shapes).
# Encoder weights are stacked on a leading layer axis and stored bf16 (MXU
# operands); biases / LN / embedding tables stay f32.
# ----------------------------------------------------------------------------
def init_behrt_params(key, *, num_diseases, num_ages, num_segments,
                      num_admission_locs, num_discharge_locs, num_genders,
                      num_ethnicities, num_insurances, hidden_size,
                      num_layers, intermediate_size,
                      max_position_embeddings=64, type_vocab_size=2):
    vocab_size = (num_diseases + num_ages + num_segments
                  + num_admission_locs + num_discharge_locs + 2)
    keys = iter(jax.random.split(key, 32))

    def nrm(shape, dtype=jnp.float32):
        return (0.02 * jax.random.normal(next(keys), shape)).astype(dtype)

    H, I, L = hidden_size, intermediate_size, num_layers

    # Packed per-layer vectors: [bq, bk, bv, bo, ln1_g, ln1_b, b2, ln2_g, ln2_b]
    bvec_h = jnp.zeros((L, 9, H), jnp.float32)
    bvec_h = bvec_h.at[:, _LN1G, :].set(1.0).at[:, _LN2G, :].set(1.0)

    return {
        "word_emb": nrm((vocab_size, H)),
        "pos_emb": nrm((max_position_embeddings, H)),
        "type_emb": nrm((type_vocab_size, H)),
        "emb_ln_g": jnp.ones((H,), jnp.float32),
        "emb_ln_b": jnp.zeros((H,), jnp.float32),
        "enc": {
            "wq": nrm((L, H, H), jnp.bfloat16),
            "wk": nrm((L, H, H), jnp.bfloat16),
            "wv": nrm((L, H, H), jnp.bfloat16),
            "wo": nrm((L, H, H), jnp.bfloat16),
            "w1": nrm((L, H, I), jnp.bfloat16),
            "w2": nrm((L, I, H), jnp.bfloat16),
            "bvec_h": bvec_h,
            "bvec_i": jnp.zeros((L, 1, I), jnp.float32),   # FFN b1
        },
        "age_emb": nrm((num_ages, H)),
        "seg_emb": nrm((num_segments, H)),
        "adm_emb": nrm((num_admission_locs, H)),
        "disch_emb": nrm((num_discharge_locs, H)),
        "gender_emb": nrm((num_genders, H)),
        "eth_emb": nrm((num_ethnicities, H)),
        "ins_emb": nrm((num_insurances, H)),
    }


# ----------------------------------------------------------------------------
# BEHRTModel.forward
# ----------------------------------------------------------------------------
def behrt_forward(params, input_ids, attention_mask, age_ids, segment_ids,
                  adm_loc_ids, disch_loc_ids, gender_ids, ethnicity_ids,
                  insurance_ids, *, num_heads):
    B, S = input_ids.shape

    # --- BertModel embeddings (gathers are glue; LN matches Bert semantics) ---
    we = params["word_emb"][input_ids]                 # (B,S,H)
    pe = params["pos_emb"][:S][None]                   # (1,S,H)
    te = params["type_emb"][0][None, None]             # (1,1,H), token_type=0
    h = _layernorm(we + pe + te, params["emb_ln_g"], params["emb_ln_b"])
    h = h.astype(jnp.float32)

    # Extended additive attention mask (HF convention): (1 - mask) * -10000
    mask_add = ((1.0 - attention_mask.astype(jnp.float32)) * -10000.0
                ).reshape(B, 1, S)

    # --- Encoder: single stacked-layer Pallas call (hot path) ---
    h = bert_encoder(h, mask_add, params["enc"], num_heads)

    cls_token = h[:, 0, :]                             # (B, H)

    # --- Demographic embeddings + fuse (tiny VPU work -> plain JAX glue) ---
    def gather(table, ids):
        ids = jnp.clip(ids, 0, table.shape[0] - 1)
        return table[ids]

    extra = (gather(params["age_emb"], age_ids)
             + gather(params["seg_emb"], segment_ids)
             + gather(params["adm_emb"], adm_loc_ids)
             + gather(params["disch_emb"], disch_loc_ids)
             + gather(params["gender_emb"], gender_ids)
             + gather(params["eth_emb"], ethnicity_ids)
             + gather(params["ins_emb"], insurance_ids)) / 7.0

    return cls_token + extra                            # extra.dim()==2 path


if __name__ == "__main__":
    key = jax.random.PRNGKey(0)

    # Small shapes consistent with the module (hidden/layers/heads scaled down).
    B, S = 2, 8
    hidden_size, num_heads, num_layers, intermediate_size = 64, 4, 2, 128
    num_diseases, num_ages, num_segments = 10, 12, 2
    num_admission_locs, num_discharge_locs = 5, 5
    num_genders, num_ethnicities, num_insurances = 2, 3, 3
    vocab_size = (num_diseases + num_ages + num_segments
                  + num_admission_locs + num_discharge_locs + 2)

    params = init_behrt_params(
        key,
        num_diseases=num_diseases, num_ages=num_ages, num_segments=num_segments,
        num_admission_locs=num_admission_locs,
        num_discharge_locs=num_discharge_locs,
        num_genders=num_genders, num_ethnicities=num_ethnicities,
        num_insurances=num_insurances,
        hidden_size=hidden_size, num_layers=num_layers,
        intermediate_size=intermediate_size)

    ks = jax.random.split(jax.random.PRNGKey(1), 9)
    input_ids = jax.random.randint(ks[0], (B, S), 0, vocab_size, jnp.int32)
    attention_mask = jnp.ones((B, S), jnp.int32).at[:, -2:].set(0)
    age_ids = jax.random.randint(ks[1], (B,), 0, num_ages, jnp.int32)
    segment_ids = jax.random.randint(ks[2], (B,), 0, num_segments, jnp.int32)
    adm_loc_ids = jax.random.randint(ks[3], (B,), 0, num_admission_locs, jnp.int32)
    disch_loc_ids = jax.random.randint(ks[4], (B,), 0, num_discharge_locs, jnp.int32)
    gender_ids = jax.random.randint(ks[5], (B,), 0, num_genders, jnp.int32)
    ethnicity_ids = jax.random.randint(ks[6], (B,), 0, num_ethnicities, jnp.int32)
    insurance_ids = jax.random.randint(ks[7], (B,), 0, num_insurances, jnp.int32)

    fwd = jax.jit(functools.partial(behrt_forward, num_heads=num_heads))
    out = fwd(params, input_ids, attention_mask, age_ids, segment_ids,
              adm_loc_ids, disch_loc_ids, gender_ids, ethnicity_ids,
              insurance_ids)
    out = jax.block_until_ready(out)
    assert out.shape == (B, hidden_size) and out.dtype == jnp.float32
    assert bool(jnp.all(jnp.isfinite(out)))
    print("KERNEL_OK")
</pallas_src>

<mosaic_0001>
module attributes {stable_mosaic.version = 11 : i64} {
  func.func @bert_encoder_kernel(%arg0: i32, %arg1: i32, %arg2: memref<1x1x8xf32, #tpu.memory_space<vmem>>, %arg3: memref<1x8x64xf32, #tpu.memory_space<vmem>>, %arg4: memref<1x64x64xbf16, #tpu.memory_space<vmem>>, %arg5: memref<1x64x64xbf16, #tpu.memory_space<vmem>>, %arg6: memref<1x64x64xbf16, #tpu.memory_space<vmem>>, %arg7: memref<1x64x64xbf16, #tpu.memory_space<vmem>>, %arg8: memref<1x64x128xbf16, #tpu.memory_space<vmem>>, %arg9: memref<1x128x64xbf16, #tpu.memory_space<vmem>>, %arg10: memref<1x9x64xf32, #tpu.memory_space<vmem>>, %arg11: memref<1x1x128xf32, #tpu.memory_space<vmem>>, %arg12: memref<1x8x64xf32, #tpu.memory_space<vmem>>) attributes {dimension_semantics = [#tpu.dimension_semantics<parallel>, #tpu.dimension_semantics<arbitrary>], iteration_bounds = array<i64: 2, 2>, scalar_prefetch = 0 : i64, scratch_operands = 0 : i64, tpu.core_type = #tpu.core_type<tc>, window_params = [{transform_indices = @transform_0, window_bounds = array<i64: 1, 1, 8>}, {transform_indices = @transform_1, window_bounds = array<i64: 1, 8, 64>}, {transform_indices = @transform_2, window_bounds = array<i64: 1, 64, 64>}, {transform_indices = @transform_3, window_bounds = array<i64: 1, 64, 64>}, {transform_indices = @transform_4, window_bounds = array<i64: 1, 64, 64>}, {transform_indices = @transform_5, window_bounds = array<i64: 1, 64, 64>}, {transform_indices = @transform_6, window_bounds = array<i64: 1, 64, 128>}, {transform_indices = @transform_7, window_bounds = array<i64: 1, 128, 64>}, {transform_indices = @transform_8, window_bounds = array<i64: 1, 9, 64>}, {transform_indices = @transform_9, window_bounds = array<i64: 1, 1, 128>}, {transform_indices = @transform_10, window_bounds = array<i64: 1, 8, 64>}]} {
    %c0_i32 = arith.constant 0 : i32
    %0 = arith.cmpi eq, %arg1, %c0_i32 : i32
    %1 = arith.extui %0 : i1 to i32
    %c0_i32_0 = arith.constant 0 : i32
    %2 = arith.cmpi ne, %1, %c0_i32_0 : i32
    scf.if %2 {
      %c0_57 = arith.constant 0 : index
      %c0_58 = arith.constant 0 : index
      %c0_59 = arith.constant 0 : index
      %160 = vector.load %arg3[%c0_57, %c0_58, %c0_59] : memref<1x8x64xf32, #tpu.memory_space<vmem>>, vector<1x8x64xf32>
      %c0_60 = arith.constant 0 : index
      %c0_61 = arith.constant 0 : index
      %c0_62 = arith.constant 0 : index
      %161 = vector.load %arg12[%c0_60, %c0_61, %c0_62] : memref<1x8x64xf32, #tpu.memory_space<vmem>>, vector<1x8x64xf32>
      tpu.vector_store %arg12[%c0_60, %c0_61, %c0_62], %160 {strides = array<i32>} : memref<1x8x64xf32, #tpu.memory_space<vmem>>, vector<1x8x64xf32>,
    } else {
    }
    %c0 = arith.constant 0 : index
    %c0_1 = arith.constant 0 : index
    %c0_2 = arith.constant 0 : index
    %3 = vector.load %arg12[%c0, %c0_1, %c0_2] : memref<1x8x64xf32, #tpu.memory_space<vmem>>, vector<1x8x64xf32>
    %4 = vector.shape_cast %3 : vector<1x8x64xf32> to vector<8x64xf32>
    %5 = arith.truncf %4 : vector<8x64xf32> to vector<8x64xbf16>
    %c0_3 = arith.constant 0 : index
    %c0_4 = arith.constant 0 : index
    %c0_5 = arith.constant 0 : index
    %6 = vector.load %arg10[%c0_3, %c0_4, %c0_5] : memref<1x9x64xf32, #tpu.memory_space<vmem>>, vector<1x9x64xf32>
    %7 = vector.shape_cast %6 : vector<1x9x64xf32> to vector<9x64xf32>
    %8 = vector.extract_strided_slice %7 {offsets = [0, 0], sizes = [1, 64], strides = [1, 1]} : vector<9x64xf32> to vector<1x64xf32>
    %9 = vector.extract_strided_slice %7 {offsets = [1, 0], sizes = [1, 64], strides = [1, 1]} : vector<9x64xf32> to vector<1x64xf32>
    %10 = vector.extract_strided_slice %7 {offsets = [2, 0], sizes = [1, 64], strides = [1, 1]} : vector<9x64xf32> to vector<1x64xf32>
    %11 = vector.extract_strided_slice %7 {offsets = [3, 0], sizes = [1, 64], strides = [1, 1]} : vector<9x64xf32> to vector<1x64xf32>
    %12 = vector.extract_strided_slice %7 {offsets = [4, 0], sizes = [1, 64], strides = [1, 1]} : vector<9x64xf32> to vector<1x64xf32>
    %13 = vector.extract_strided_slice %7 {offsets = [5, 0], sizes = [1, 64], strides = [1, 1]} : vector<9x64xf32> to vector<1x64xf32>
    %14 = vector.extract_strided_slice %7 {offsets = [7, 0], sizes = [1, 64], strides = [1, 1]} : vector<9x64xf32> to vector<1x64xf32>
    %15 = vector.extract_strided_slice %7 {offsets = [8, 0], sizes = [1, 64], strides = [1, 1]} : vector<9x64xf32> to vector<1x64xf32>
    %16 = vector.extract_strided_slice %7 {offsets = [6, 0], sizes = [1, 64], strides = [1, 1]} : vector<9x64xf32> to vector<1x64xf32>
    %c0_6 = arith.constant 0 : index
    %c0_7 = arith.constant 0 : index
    %c0_8 = arith.constant 0 : index
    %17 = vector.load %arg11[%c0_6, %c0_7, %c0_8] : memref<1x1x128xf32, #tpu.memory_space<vmem>>, vector<1x1x128xf32>
    %18 = vector.shape_cast %17 : vector<1x1x128xf32> to vector<1x128xf32>
    %c0_9 = arith.constant 0 : index
    %c0_10 = arith.constant 0 : index
    %c0_11 = arith.constant 0 : index
    %19 = vector.load %arg4[%c0_9, %c0_10, %c0_11] : memref<1x64x64xbf16, #tpu.memory_space<vmem>>, vector<1x64x64xbf16>
    %20 = vector.shape_cast %19 : vector<1x64x64xbf16> to vector<64x64xbf16>
    %cst = arith.constant dense<0.000000e+00> : vector<8x64xf32>
    %21 = tpu.matmul %5, %20, %cst {dimension_numbers = #tpu.dot_dimension_numbers<[1], [0], [0], [1], [0, 0, 1, 1], [], []>} : vector<8x64xbf16>, vector<64x64xbf16>, vector<8x64xf32> -> vector<8x64xf32>
    %22 = vector.broadcast %8 : vector<1x64xf32> to vector<8x64xf32>
    %23 = arith.addf %21, %22 : vector<8x64xf32>
    %c0_12 = arith.constant 0 : index
    %c0_13 = arith.constant 0 : index
    %c0_14 = arith.constant 0 : index
    %24 = vector.load %arg5[%c0_12, %c0_13, %c0_14] : memref<1x64x64xbf16, #tpu.memory_space<vmem>>, vector<1x64x64xbf16>
    %25 = vector.shape_cast %24 : vector<1x64x64xbf16> to vector<64x64xbf16>
    %cst_15 = arith.constant dense<0.000000e+00> : vector<8x64xf32>
    %26 = tpu.matmul %5, %25, %cst_15 {dimension_numbers = #tpu.dot_dimension_numbers<[1], [0], [0], [1], [0, 0, 1, 1], [], []>} : vector<8x64xbf16>, vector<64x64xbf16>, vector<8x64xf32> -> vector<8x64xf32>
    %27 = vector.broadcast %9 : vector<1x64xf32> to vector<8x64xf32>
    %28 = arith.addf %26, %27 : vector<8x64xf32>
    %c0_16 = arith.constant 0 : index
    %c0_17 = arith.constant 0 : index
    %c0_18 = arith.constant 0 : index
    %29 = vector.load %arg6[%c0_16, %c0_17, %c0_18] : memref<1x64x64xbf16, #tpu.memory_space<vmem>>, vector<1x64x64xbf16>
    %30 = vector.shape_cast %29 : vector<1x64x64xbf16> to vector<64x64xbf16>
    %cst_19 = arith.constant dense<0.000000e+00> : vector<8x64xf32>
    %31 = tpu.matmul %5, %30, %cst_19 {dimension_numbers = #tpu.dot_dimension_numbers<[1], [0], [0], [1], [0, 0, 1, 1], [], []>} : vector<8x64xbf16>, vector<64x64xbf16>, vector<8x64xf32> -> vector<8x64xf32>
    %32 = vector.broadcast %10 : vector<1x64xf32> to vector<8x64xf32>
    %33 = arith.addf %31, %32 : vector<8x64xf32>
    %cst_20 = arith.constant 2.500000e-01 : f32
    %34 = vector.broadcast %cst_20 : f32 to vector<8x64xf32>
    %35 = arith.mulf %23, %34 : vector<8x64xf32>
    %36 = vector.shape_cast %35 : vector<8x64xf32> to vector<1x8x64xf32>
    %37 = vector.shape_cast %28 : vector<8x64xf32> to vector<1x8x64xf32>
    %38 = vector.shape_cast %33 : vector<8x64xf32> to vector<1x8x64xf32>
    %39 = vector.extract_strided_slice %36 {offsets = [0, 0, 0], sizes = [1, 8, 16], strides = [1, 1, 1]} : vector<1x8x64xf32> to vector<1x8x16xf32>
    %40 = vector.extract_strided_slice %36 {offsets = [0, 0, 16], sizes = [1, 8, 16], strides = [1, 1, 1]} : vector<1x8x64xf32> to vector<1x8x16xf32>
    %41 = vector.extract_strided_slice %36 {offsets = [0, 0, 32], sizes = [1, 8, 16], strides = [1, 1, 1]} : vector<1x8x64xf32> to vector<1x8x16xf32>
    %42 = vector.extract_strided_slice %36 {offsets = [0, 0, 48], sizes = [1, 8, 16], strides = [1, 1, 1]} : vector<1x8x64xf32> to vector<1x8x16xf32>
    %43 = tpu.concatenate %39, %40, %41, %42 in 0 : vector<1x8x16xf32>, vector<1x8x16xf32>, vector<1x8x16xf32>, vector<1x8x16xf32> -> vector<4x8x16xf32>
    %44 = arith.truncf %43 : vector<4x8x16xf32> to vector<4x8x16xbf16>
    %45 = vector.extract_strided_slice %37 {offsets = [0, 0, 0], sizes = [1, 8, 16], strides = [1, 1, 1]} : vector<1x8x64xf32> to vector<1x8x16xf32>
    %46 = vector.extract_strided_slice %37 {offsets = [0, 0, 16], sizes = [1, 8, 16], strides = [1, 1, 1]} : vector<1x8x64xf32> to vector<1x8x16xf32>
    %47 = vector.extract_strided_slice %37 {offsets = [0, 0, 32], sizes = [1, 8, 16], strides = [1, 1, 1]} : vector<1x8x64xf32> to vector<1x8x16xf32>
    %48 = vector.extract_strided_slice %37 {offsets = [0, 0, 48], sizes = [1, 8, 16], strides = [1, 1, 1]} : vector<1x8x64xf32> to vector<1x8x16xf32>
    %49 = tpu.concatenate %45, %46, %47, %48 in 0 : vector<1x8x16xf32>, vector<1x8x16xf32>, vector<1x8x16xf32>, vector<1x8x16xf32> -> vector<4x8x16xf32>
    %50 = arith.truncf %49 : vector<4x8x16xf32> to vector<4x8x16xbf16>
    %51 = vector.extract_strided_slice %38 {offsets = [0, 0, 0], sizes = [1, 8, 16], strides = [1, 1, 1]} : vector<1x8x64xf32> to vector<1x8x16xf32>
    %52 = vector.extract_strided_slice %38 {offsets = [0, 0, 16], sizes = [1, 8, 16], strides = [1, 1, 1]} : vector<1x8x64xf32> to vector<1x8x16xf32>
    %53 = vector.extract_strided_slice %38 {offsets = [0, 0, 32], sizes = [1, 8, 16], strides = [1, 1, 1]} : vector<1x8x64xf32> to vector<1x8x16xf32>
    %54 = vector.extract_strided_slice %38 {offsets = [0, 0, 48], sizes = [1, 8, 16], strides = [1, 1, 1]} : vector<1x8x64xf32> to vector<1x8x16xf32>
    %55 = tpu.concatenate %51, %52, %53, %54 in 0 : vector<1x8x16xf32>, vector<1x8x16xf32>, vector<1x8x16xf32>, vector<1x8x16xf32> -> vector<4x8x16xf32>
    %56 = arith.truncf %55 : vector<4x8x16xf32> to vector<4x8x16xbf16>
    %c0_21 = arith.constant 0 : index
    %c0_22 = arith.constant 0 : index
    %c0_23 = arith.constant 0 : index
    %57 = vector.load %arg2[%c0_21, %c0_22, %c0_23] : memref<1x1x8xf32, #tpu.memory_space<vmem>>, vector<1x1x8xf32>
    %58 = vector.shape_cast %57 : vector<1x1x8xf32> to vector<1x1x8xf32>
    %59 = vector.broadcast %58 : vector<1x1x8xf32> to vector<1x8x8xf32>
    %60 = tpu.concatenate %59, %59, %59, %59 in 0 : vector<1x8x8xf32>, vector<1x8x8xf32>, vector<1x8x8xf32>, vector<1x8x8xf32> -> vector<4x8x8xf32>
    "tpu.trace_start"() <{level = 10 : i32, message = "bqd,bkd->bqk"}> : () -> ()
    %cst_24 = arith.constant dense<0.000000e+00> : vector<4x8x8xf32>
    %61 = tpu.matmul %44, %50, %cst_24 {dimension_numbers = #tpu.dot_dimension_numbers<[2], [2], [1], [1], [0, 0, 0, 1, 1, 1], [0], [0]>} : vector<4x8x16xbf16>, vector<4x8x16xbf16>, vector<4x8x8xf32> -> vector<4x8x8xf32>
    "tpu.trace_stop"() : () -> ()
    %62 = arith.addf %61, %60 : vector<4x8x8xf32>
    %cst_25 = arith.constant dense<0xFF800000> : vector<4x8xf32>
    %63 = vector.multi_reduction <maximumf>, %62, %cst_25 [2] : vector<4x8x8xf32> to vector<4x8xf32>
    %64 = vector.shape_cast %63 : vector<4x8xf32> to vector<4x8x1xf32>
    %65 = vector.broadcast %64 : vector<4x8x1xf32> to vector<4x8x8xf32>
    %66 = arith.subf %62, %65 : vector<4x8x8xf32>
    %67 = math.exp %66 : vector<4x8x8xf32>
    %cst_26 = arith.constant dense<0.000000e+00> : vector<4x8xf32>
    %68 = vector.multi_reduction <add>, %67, %cst_26 [2] : vector<4x8x8xf32> to vector<4x8xf32>
    %69 = vector.shape_cast %68 : vector<4x8xf32> to vector<4x8x1xf32>
    %70 = tpu.reciprocal %69 {approx = true} : vector<4x8x1xf32> -> vector<4x8x1xf32>
    %71 = vector.broadcast %70 : vector<4x8x1xf32> to vector<4x8x8xf32>
    %72 = arith.mulf %67, %71 : vector<4x8x8xf32>
    %73 = arith.truncf %72 : vector<4x8x8xf32> to vector<4x8x8xbf16>
    "tpu.trace_start"() <{level = 10 : i32, message = "bqk,bkd->bqd"}> : () -> ()
    %cst_27 = arith.constant dense<0.000000e+00> : vector<4x8x16xf32>
    %74 = tpu.matmul %73, %56, %cst_27 {dimension_numbers = #tpu.dot_dimension_numbers<[2], [1], [1], [2], [0, 0, 0, 1, 1, 2], [0], [0]>} : vector<4x8x8xbf16>, vector<4x8x16xbf16>, vector<4x8x16xf32> -> vector<4x8x16xf32>
    "tpu.trace_stop"() : () -> ()
    %75 = vector.extract_strided_slice %74 {offsets = [0, 0, 0], sizes = [1, 8, 16], strides = [1, 1, 1]} : vector<4x8x16xf32> to vector<1x8x16xf32>
    %76 = vector.extract_strided_slice %74 {offsets = [1, 0, 0], sizes = [1, 8, 16], strides = [1, 1, 1]} : vector<4x8x16xf32> to vector<1x8x16xf32>
    %77 = vector.extract_strided_slice %74 {offsets = [2, 0, 0], sizes = [1, 8, 16], strides = [1, 1, 1]} : vector<4x8x16xf32> to vector<1x8x16xf32>
    %78 = vector.extract_strided_slice %74 {offsets = [3, 0, 0], sizes = [1, 8, 16], strides = [1, 1, 1]} : vector<4x8x16xf32> to vector<1x8x16xf32>
    %79 = tpu.concatenate %75, %76, %77, %78 in 2 : vector<1x8x16xf32>, vector<1x8x16xf32>, vector<1x8x16xf32>, vector<1x8x16xf32> -> vector<1x8x64xf32>
    %80 = vector.shape_cast %79 : vector<1x8x64xf32> to vector<8x64xf32>
    %81 = arith.truncf %80 : vector<8x64xf32> to vector<8x64xbf16>
    %c0_28 = arith.constant 0 : index
    %c0_29 = arith.constant 0 : index
    %c0_30 = arith.constant 0 : index
    %82 = vector.load %arg7[%c0_28, %c0_29, %c0_30] : memref<1x64x64xbf16, #tpu.memory_space<vmem>>, vector<1x64x64xbf16>
    %83 = vector.shape_cast %82 : vector<1x64x64xbf16> to vector<64x64xbf16>
    %cst_31 = arith.constant dense<0.000000e+00> : vector<8x64xf32>
    %84 = tpu.matmul %81, %83, %cst_31 {dimension_numbers = #tpu.dot_dimension_numbers<[1], [0], [0], [1], [0, 0, 1, 1], [], []>} : vector<8x64xbf16>, vector<64x64xbf16>, vector<8x64xf32> -> vector<8x64xf32>
    %85 = vector.broadcast %11 : vector<1x64xf32> to vector<8x64xf32>
    %86 = arith.addf %84, %85 : vector<8x64xf32>
    %87 = arith.addf %4, %86 : vector<8x64xf32>
    %cst_32 = arith.constant dense<0.000000e+00> : vector<8xf32>
    %88 = vector.multi_reduction <add>, %87, %cst_32 [1] : vector<8x64xf32> to vector<8xf32>
    %89 = vector.shape_cast %88 : vector<8xf32> to vector<8x1xf32>
    %cst_33 = arith.constant 6.400000e+01 : f32
    %90 = vector.broadcast %cst_33 : f32 to vector<8x1xf32>
    %91 = arith.divf %89, %90 : vector<8x1xf32>
    %92 = vector.broadcast %91 : vector<8x1xf32> to vector<8x64xf32>
    %93 = arith.subf %87, %92 : vector<8x64xf32>
    %94 = arith.mulf %93, %93 : vector<8x64xf32>
    %cst_34 = arith.constant dense<0.000000e+00> : vector<8xf32>
    %95 = vector.multi_reduction <add>, %94, %cst_34 [1] : vector<8x64xf32> to vector<8xf32>
    %96 = vector.shape_cast %95 : vector<8xf32> to vector<8x1xf32>
    %cst_35 = arith.constant 6.400000e+01 : f32
    %97 = vector.broadcast %cst_35 : f32 to vector<8x1xf32>
    %98 = arith.divf %96, %97 : vector<8x1xf32>
    %99 = vector.broadcast %91 : vector<8x1xf32> to vector<8x64xf32>
    %100 = arith.subf %87, %99 : vector<8x64xf32>
    %cst_36 = arith.constant 9.99999996E-13 : f32
    %101 = vector.broadcast %cst_36 : f32 to vector<8x1xf32>
    %102 = arith.addf %98, %101 : vector<8x1xf32>
    %103 = math.rsqrt %102 : vector<8x1xf32>
    %104 = vector.broadcast %103 : vector<8x1xf32> to vector<8x64xf32>
    %105 = arith.mulf %100, %104 : vector<8x64xf32>
    %106 = vector.broadcast %12 : vector<1x64xf32> to vector<8x64xf32>
    %107 = arith.mulf %105, %106 : vector<8x64xf32>
    %108 = vector.broadcast %13 : vector<1x64xf32> to vector<8x64xf32>
    %109 = arith.addf %107, %108 : vector<8x64xf32>
    %110 = arith.truncf %109 : vector<8x64xf32> to vector<8x64xbf16>
    %c0_37 = arith.constant 0 : index
    %c0_38 = arith.constant 0 : index
    %c0_39 = arith.constant 0 : index
    %111 = vector.load %arg8[%c0_37, %c0_38, %c0_39] : memref<1x64x128xbf16, #tpu.memory_space<vmem>>, vector<1x64x128xbf16>
    %112 = vector.shape_cast %111 : vector<1x64x128xbf16> to vector<64x128xbf16>
    %cst_40 = arith.constant dense<0.000000e+00> : vector<8x128xf32>
    %113 = tpu.matmul %110, %112, %cst_40 {dimension_numbers = #tpu.dot_dimension_numbers<[1], [0], [0], [1], [0, 0, 1, 1], [], []>} : vector<8x64xbf16>, vector<64x128xbf16>, vector<8x128xf32> -> vector<8x128xf32>
    %114 = vector.broadcast %18 : vector<1x128xf32> to vector<8x128xf32>
    %115 = arith.addf %113, %114 : vector<8x128xf32>
    %cst_41 = arith.constant 5.000000e-01 : f32
    %116 = vector.broadcast %cst_41 : f32 to vector<8x128xf32>
    %117 = arith.mulf %116, %115 : vector<8x128xf32>
    %cst_42 = arith.constant 4.471500e-02 : f32
    %118 = vector.broadcast %cst_42 : f32 to vector<8x128xf32>
    %119 = arith.mulf %118, %115 : vector<8x128xf32>
    %120 = arith.mulf %119, %115 : vector<8x128xf32>
    %121 = arith.mulf %120, %115 : vector<8x128xf32>
    %122 = arith.addf %115, %121 : vector<8x128xf32>
    %cst_43 = arith.constant 0.797884583 : f32
    %123 = vector.broadcast %cst_43 : f32 to vector<8x128xf32>
    %124 = arith.mulf %123, %122 : vector<8x128xf32>
    %125 = math.tanh %124 : vector<8x128xf32>
    %cst_44 = arith.constant 1.000000e+00 : f32
    %126 = vector.broadcast %cst_44 : f32 to vector<8x128xf32>
    %127 = arith.addf %126, %125 : vector<8x128xf32>
    %128 = arith.mulf %117, %127 : vector<8x128xf32>
    %129 = arith.truncf %128 : vector<8x128xf32> to vector<8x128xbf16>
    %c0_45 = arith.constant 0 : index
    %c0_46 = arith.constant 0 : index
    %c0_47 = arith.constant 0 : index
    %130 = vector.load %arg9[%c0_45, %c0_46, %c0_47] : memref<1x128x64xbf16, #tpu.memory_space<vmem>>, vector<1x128x64xbf16>
    %131 = vector.shape_cast %130 : vector<1x128x64xbf16> to vector<128x64xbf16>
    %cst_48 = arith.constant dense<0.000000e+00> : vector<8x64xf32>
    %132 = tpu.matmul %129, %131, %cst_48 {dimension_numbers = #tpu.dot_dimension_numbers<[1], [0], [0], [1], [0, 0, 1, 1], [], []>} : vector<8x128xbf16>, vector<128x64xbf16>, vector<8x64xf32> -> vector<8x64xf32>
    %133 = vector.broadcast %16 : vector<1x64xf32> to vector<8x64xf32>
    %134 = arith.addf %132, %133 : vector<8x64xf32>
    %135 = arith.addf %109, %134 : vector<8x64xf32>
    %cst_49 = arith.constant dense<0.000000e+00> : vector<8xf32>
    %136 = vector.multi_reduction <add>, %135, %cst_49 [1] : vector<8x64xf32> to vector<8xf32>
    %137 = vector.shape_cast %136 : vector<8xf32> to vector<8x1xf32>
    %cst_50 = arith.constant 6.400000e+01 : f32
    %138 = vector.broadcast %cst_50 : f32 to vector<8x1xf32>
    %139 = arith.divf %137, %138 : vector<8x1xf32>
    %140 = vector.broadcast %139 : vector<8x1xf32> to vector<8x64xf32>
    %141 = arith.subf %135, %140 : vector<8x64xf32>
    %142 = arith.mulf %141, %141 : vector<8x64xf32>
    %cst_51 = arith.constant dense<0.000000e+00> : vector<8xf32>
    %143 = vector.multi_reduction <add>, %142, %cst_51 [1] : vector<8x64xf32> to vector<8xf32>
    %144 = vector.shape_cast %143 : vector<8xf32> to vector<8x1xf32>
    %cst_52 = arith.constant 6.400000e+01 : f32
    %145 = vector.broadcast %cst_52 : f32 to vector<8x1xf32>
    %146 = arith.divf %144, %145 : vector<8x1xf32>
    %147 = vector.broadcast %139 : vector<8x1xf32> to vector<8x64xf32>
    %148 = arith.subf %135, %147 : vector<8x64xf32>
    %cst_53 = arith.constant 9.99999996E-13 : f32
    %149 = vector.broadcast %cst_53 : f32 to vector<8x1xf32>
    %150 = arith.addf %146, %149 : vector<8x1xf32>
    %151 = math.rsqrt %150 : vector<8x1xf32>
    %152 = vector.broadcast %151 : vector<8x1xf32> to vector<8x64xf32>
    %153 = arith.mulf %148, %152 : vector<8x64xf32>
    %154 = vector.broadcast %14 : vector<1x64xf32> to vector<8x64xf32>
    %155 = arith.mulf %153, %154 : vector<8x64xf32>
    %156 = vector.broadcast %15 : vector<1x64xf32> to vector<8x64xf32>
    %157 = arith.addf %155, %156 : vector<8x64xf32>
    %158 = vector.shape_cast %157 : vector<8x64xf32> to vector<1x8x64xf32>
    %c0_54 = arith.constant 0 : index
    %c0_55 = arith.constant 0 : index
    %c0_56 = arith.constant 0 : index
    %159 = vector.load %arg12[%c0_54, %c0_55, %c0_56] : memref<1x8x64xf32, #tpu.memory_space<vmem>>, vector<1x8x64xf32>
    tpu.vector_store %arg12[%c0_54, %c0_55, %c0_56], %158 {strides = array<i32>} : memref<1x8x64xf32, #tpu.memory_space<vmem>>, vector<1x8x64xf32>,
    return
  }
  func.func @transform_0(%arg0: i32, %arg1: i32) -> (i32, i32, i32) {
    %c0_i32 = arith.constant 0 : i32
    %c0_i32_0 = arith.constant 0 : i32
    %c0_i32_1 = arith.constant 0 : i32
    return %arg0, %c0_i32, %c0_i32_0 : i32, i32, i32
  }
  func.func @transform_1(%arg0: i32, %arg1: i32) -> (i32, i32, i32) {
    %c0_i32 = arith.constant 0 : i32
    %c0_i32_0 = arith.constant 0 : i32
    %c0_i32_1 = arith.constant 0 : i32
    return %arg0, %c0_i32, %c0_i32_0 : i32, i32, i32
  }
  func.func @transform_2(%arg0: i32, %arg1: i32) -> (i32, i32, i32) {
    %c0_i32 = arith.constant 0 : i32
    %c0_i32_0 = arith.constant 0 : i32
    %c0_i32_1 = arith.constant 0 : i32
    return %arg1, %c0_i32, %c0_i32_0 : i32, i32, i32
  }
  func.func @transform_3(%arg0: i32, %arg1: i32) -> (i32, i32, i32) {
    %c0_i32 = arith.constant 0 : i32
    %c0_i32_0 = arith.constant 0 : i32
    %c0_i32_1 = arith.constant 0 : i32
    return %arg1, %c0_i32, %c0_i32_0 : i32, i32, i32
  }
  func.func @transform_4(%arg0: i32, %arg1: i32) -> (i32, i32, i32) {
    %c0_i32 = arith.constant 0 : i32
    %c0_i32_0 = arith.constant 0 : i32
    %c0_i32_1 = arith.constant 0 : i32
    return %arg1, %c0_i32, %c0_i32_0 : i32, i32, i32
  }
  func.func @transform_5(%arg0: i32, %arg1: i32) -> (i32, i32, i32) {
    %c0_i32 = arith.constant 0 : i32
    %c0_i32_0 = arith.constant 0 : i32
    %c0_i32_1 = arith.constant 0 : i32
    return %arg1, %c0_i32, %c0_i32_0 : i32, i32, i32
  }
  func.func @transform_6(%arg0: i32, %arg1: i32) -> (i32, i32, i32) {
    %c0_i32 = arith.constant 0 : i32
    %c0_i32_0 = arith.constant 0 : i32
    %c0_i32_1 = arith.constant 0 : i32
    return %arg1, %c0_i32, %c0_i32_0 : i32, i32, i32
  }
  func.func @transform_7(%arg0: i32, %arg1: i32) -> (i32, i32, i32) {
    %c0_i32 = arith.constant 0 : i32
    %c0_i32_0 = arith.constant 0 : i32
    %c0_i32_1 = arith.constant 0 : i32
    return %arg1, %c0_i32, %c0_i32_0 : i32, i32, i32
  }
  func.func @transform_8(%arg0: i32, %arg1: i32) -> (i32, i32, i32) {
    %c0_i32 = arith.constant 0 : i32
    %c0_i32_0 = arith.constant 0 : i32
    %c0_i32_1 = arith.constant 0 : i32
    return %arg1, %c0_i32, %c0_i32_0 : i32, i32, i32
  }
  func.func @transform_9(%arg0: i32, %arg1: i32) -> (i32, i32, i32) {
    %c0_i32 = arith.constant 0 : i32
    %c0_i32_0 = arith.constant 0 : i32
    %c0_i32_1 = arith.constant 0 : i32
    return %arg1, %c0_i32, %c0_i32_0 : i32, i32, i32
  }
  func.func @transform_10(%arg0: i32, %arg1: i32) -> (i32, i32, i32) {
    %c0_i32 = arith.constant 0 : i32
    %c0_i32_0 = arith.constant 0 : i32
    %c0_i32_1 = arith.constant 0 : i32
    return %arg0, %c0_i32, %c0_i32_0 : i32, i32, i32
  }
}

</mosaic_0001>

<bundles_post_ra>
// kernel: behrt_forward.1
= control target key start
LH: loop header
LB: loop body
LE: loop exit
PB: predicated region body
PF: predicated region fallthrough
CT: control target
= control target key end

     0   :  { %s2216_s13 = smov 0   ;;  %s2218_s14 = smov 0   ;;  %s2502_s0 = inlined_call_operand.vmem [shape: f32[2,1,8], index: 0, kind: input, shape index: {}]   ;;  %s2503_s1 = inlined_call_operand.vmem [shape: f32[2,8,64], index: 1, kind: input, shape index: {}]   ;;  %s2504_s2 = inlined_call_operand.vmem [shape: bf16[2,64,64], index: 2, kind: input, shape index: {}]   ;;  %s2505_s3 = inlined_call_operand.vmem [shape: bf16[2,64,64], index: 3, kind: input, shape index: {}]   ;;  %s2506_s4 = inlined_call_operand.vmem [shape: bf16[2,64,64], index: 4, kind: input, shape index: {}]   ;;  %s2507_s5 = inlined_call_operand.vmem [shape: bf16[2,64,64], index: 5, kind: input, shape index: {}]   ;;  %s2508_s6 = inlined_call_operand.vmem [shape: bf16[2,64,128], index: 6, kind: input, shape index: {}]   ;;  %s2509_s7 = inlined_call_operand.vmem [shape: bf16[2,128,64], index: 7, kind: input, shape index: {}]   ;;  %s2510_s8 = inlined_call_operand.vmem [shape: f32[2,9,64], index: 8, kind: input, shape index: {}]   ;;  %s2511_s9 = inlined_call_operand.vmem [shape: f32[2,1,128], index: 9, kind: input, shape index: {}]   ;;  %s2512_s10 = inlined_call_operand.vmem [shape: f32[2,8,64], index: 10, kind: output, shape index: {}]  }
   0x1   :  { %2516 = sst [smem:[#allocation7_spill]] %s2503_s1  ;;  %s2220_s15 = smov 0  }
   0x2   :  { %2517 = sst [smem:[#allocation8_spill]] %s2504_s2  ;;  %s2222_s16 = smov 0  }
   0x3   :  { %2518 = sst [smem:[#allocation9_spill]] %s2505_s3  ;;  %s2224_s17 = smov 0  }
   0x4   :  { %2519 = sst [smem:[#allocation10_spill]] %s2506_s4 }
   0x5   :  { %2520 = sst [smem:[#allocation11_spill]] %s2507_s5 }
   0x6 LB: > { %2521 = sst [smem:[#allocation2_spill]] %s2143_s15  ;;  %s29_s18 = sadd.s32 1, %s2143_s15  ;;  %s2151_s17 = sphi %s2224_s17, %s20_s17   ;;  %s2147_s16 = sphi %s2222_s16, %s2536_s16   ;;  %s2143_s15 = sphi %s2220_s15, %s2535_s15   ;;  %s2139_s14 = sphi %s2218_s14, %s2534_s14   ;;  %s2135_s13 = sphi %s2216_s13, %s2533_s13  }
   0x7   : > { %2522 = sst [smem:[#allocation3_spill]] %s2147_s16  ;;  %s32_s19 = sadd.s32 1, %s2147_s16 }
   0x8   : > { %2523 = sst [smem:[#allocation4_spill]] %s2151_s17  ;;  %p30_p0 = scmp.ge.s32.totalorder %s29_s18, 2 }
   0x9   : > { %p1766_p1 = scmp.ge.s32.totalorder %s2151_s17, 1  ;;  %p409_p2 = scmp.lt.s32.totalorder %s2151_s17, 5 }
   0xa   : > { %s2538_s18 = smov (%p30_p0, %s29_s18), 0  ;;  %s2540_s19 = smov (!%p30_p0, %s32_s19), %s2147_s16 }
   0xb   : > { %2524 = sst [smem:[#allocation5_spill]] %s2538_s18  ;;  %p410_p3 = pnand %p1766_p1, %p409_p2 }
   0xc   : > { %p34_p4 = scmp.ge.s32.totalorder %s2540_s19, 2  ;;  %p486_p5 = scmp.lt.s32.totalorder (!%p410_p3), %s2139_s14, 1 }
   0xd   : > { %413 = sbr.rel (%p410_p3) target bundleno = 2451 (0x993), region = 60  ;;  %p493_p6 = scmp.lt.s32.totalorder (!%p410_p3), %s2135_s13, 1 }
   0xe   : > { %s2542_s19 = smov (%p34_p4, %s2540_s19), 0  ;;  %s2526_s1 = sld [smem:[#allocation7_spill]] (!%p410_p3) }
   0xf   : > { %2525 = sst [smem:[#allocation6_spill]] %s2542_s19  ;;  %p1783_p7 = scmp.ne.s32.totalorder (!%p410_p3), %s2135_s13, 0 }
  0x10   : > { %s2527_s2 = sld [smem:[#allocation8_spill]] (!%p410_p3) }
  0x11   : > { %s2528_s3 = sld [smem:[#allocation9_spill]] (!%p410_p3) }
  0x12   : > { %s2544_s14 = smov (!%p486_p5, %s2139_s14), 1  ;;  %s2529_s4 = sld [smem:[#allocation10_spill]] }
  0x13   : > { %s2252_s20 = scalar_select %p493_p6, %s2135_s13, 1 }
  0x14   : > { %s1767_s24 = sshll.u32 %s2544_s14, 3  ;;  %s2530_s5 = sld [smem:[#allocation11_spill]] }
  0x15   : > { %s492_s27 = scalar_lea.vmem %s2526_s1, %s1767_s24  ;;  %s1830_s28 = sshll.u32 %s2252_s20, 5 }
  0x16   : > { %s497_s11 = scalar_lea.vmem %s2527_s2, %s1830_s28  ;;  %s2284_s29 = scalar_lea.vmem %s2508_s6, %s1830_s28 }
  0x17   : > { %s2269_s18 = scalar_lea.vmem %s2528_s3, %s1830_s28  ;;  %s1835_s30 = sshll.u32 %s2252_s20, 6 }
  0x18   : > { %s2274_s16 = scalar_lea.vmem %s2529_s4, %s1830_s28  ;;  %s2290_s12 = scalar_lea.vmem %s2509_s7, %s1835_s30 }
  0x19   : > { %s1836_s3 = sshll.u32 %s2252_s20, 4  ;;  %539 = sbr.rel (%p1783_p7) target bundleno = 32 (0x20), region = 64 }
  0x1a   : > { %s2279_s25 = scalar_lea.vmem %s2530_s5, %s1830_s28  ;;  %s2296_s4 = scalar_lea.vmem %s2510_s8, %s1836_s3 }
  0x1b   : > { %s530_s5 = scalar_lea.vmem %s2511_s9, %s2252_s20  ;;  %s2305_s28 = scalar_lea.vmem %s2512_s10, %s1767_s24 }
  0x1e   : > { %v540_v0 = vld [vmem:[%s492_s27] sm:$0xff]  ;;  %vm541_vm0 = vcmask 523264  }
  0x1f   : > { %542 = vst.msk [vmem:[%s2305_s28] sm:$0xff] %vm541_vm0, %v540_v0 }
  0x20 PF: > { %v2063_v1 = vld [vmem:[%s497_s11 + $0x18] sm:$0xff]   ;;  %v2153_v2 = vmov 0.0   ;;  %v2064_v3 = vld [vmem:[%s497_s11 + $0x10] sm:$0xff]   ;;  %vm2154_vm1 = vmmov 0   ;;  %v2065_v4 = vld [vmem:[%s497_s11 + $0x8] sm:$0xff]   ;;  %vm584_vm2 = vcmask 523264   ;;  %v556_v13 = vlaneseq }
  0x21   : > { %1887 = vmatprep.subr.bf16.mxu1 %v2153_v2  ;;  %1911 = vmatprep.subr.bf16.mxu0 %v2153_v2  ;;  %v2066_v5 = vld [vmem:[%s497_s11] sm:$0xff]   ;;  %v2067_v7 = vld [vmem:[%s2269_s18 + $0x18] sm:$0xff]   ;;  %v2068_v9 = vld [vmem:[%s2269_s18 + $0x10] sm:$0xff]   ;;  %s2155_s2 = smov 112   ;;  %vm830_vm3 = vcmask 130048   ;;  %s2156_s3 = smov 80  }
  0x22   : > { %1888 = vmatpush3.bf16.msra.mxu1 %v2063_v1  ;;  %1895 = vmatprep.mubr.msk.bf16.mxu1 %vm2154_vm1, %v2153_v2  ;;  %v2069_v10 = vld [vmem:[%s2269_s18 + $0x8] sm:$0xff]   ;;  %v2070_v11 = vld [vmem:[%s2269_s18] sm:$0xff]   ;;  %v2071_v12 = vld [vmem:[%s2274_s16 + $0x18] sm:$0xff]   ;;  %v2340_v14 = vshrl.u32 %v556_v13, 7  ;;  %s2157_s13 = smov 96   ;;  %vm1067_vm4 = vcmask 1043456   ;;  %s2531_s18 = scalar_lea.vmem %s2502_s0, %s2544_s14 }
  0x23   : > { %1889 = vmatprep.subr.bf16.mxu1 %v2153_v2  ;;  %1919 = vmatprep.mubr.msk.bf16.mxu0 %vm2154_vm1, %v2153_v2  ;;  %v2072_v15 = vld [vmem:[%s2274_s16 + $0x10] sm:$0xff]   ;;  %v2345_v17 = vld [vmem:[%s2296_s4] sm:$0xff]  ;;  %v2073_v18 = vld [vmem:[%s2274_s16 + $0x8] sm:$0xff]   ;;  %vm1015_vm5 = vcmask 64512   ;;  %s2158_s14 = smov 16   ;;  %s2159_s24 = smov 32  }
  0x24   : > { %1912 = vmatpush3.bf16.msra.mxu0 %v2071_v12  ;;  %v558_v16 = vsub.s32 0, %v2340_v14  ;;  %v2074_v20 = vld [vmem:[%s2274_s16] sm:$0xff]   ;;  %v638_v27 = vsub.s32 1, %v2340_v14  ;;  %v714_v52 = vsub.s32 2, %v2340_v14  ;;  %s2160_s27 = smov 48   ;;  %vm1262_vm6 = vcmask 261120  }
  0x25   : > { %1913 = vmatprep.subr.bf16.mxu0 %v2153_v2  ;;  %v1799_v61 = vld [vmem:[%s2531_s18] ss:$0 sm:$0xff]  ;;  %vm1264_vm7 = vcmask 392192  }
  0x26   : > { %1890 = vmatpush3.bf16.msra.mxu1 %v2064_v3  ;;  %v2318_v6 = vld [vmem:[%s2305_s28] sm:$0xff]  ;;  %v559_v19 = vrot.slane %v2345_v17, %v558_v16  ;;  %v639_v28 = vrot.slane %v2345_v17, %v638_v27  ;;  %v715_v54 = vrot.slane %v2345_v17, %v714_v52 }
  0x27   : > { %1891 = vmatprep.subr.bf16.mxu1 %v2153_v2  ;;  %v544_v8 = vpack.c.bf16 %v2318_v6, %v2318_v6 }
  0x28   : > { %1914 = vmatpush3.bf16.msra.mxu0 %v2072_v15 }
  0x29   : > { %1915 = vmatprep.subr.bf16.mxu0 %v2153_v2 }
  0x2a   : > { %1892 = vmatpush3.bf16.msra.mxu1 %v2065_v4 }
  0x2b   : > { %1893 = vmatprep.subr.bf16.mxu1 %v2153_v2 }
  0x2c   : > { %1916 = vmatpush3.bf16.msra.mxu0 %v2073_v18 }
  0x2d   : > { %1917 = vmatprep.subr.bf16.mxu0 %v2153_v2 }
  0x2e   : > { %1894 = vmatpush3.bf16.msra.mxu1 %v2066_v5 }
  0x2f   : > { %1899 = vmatprep.subr.bf16.mxu1 %v2153_v2 }
  0x30   : > { %1918 = vmatpush3.bf16.msra.mxu0 %v2074_v20 }
  0x31   : > { %1896 = vmatmul.mubr.msk.bf16.vlgmr.msra.gmra.mxu1 %vm584_vm2, %v544_v8  ;;  %1935 = vmatprep.subr.bf16.mxu0 %v2153_v2 }
  0x32   : > { %1900 = vmatpush3.bf16.msra.mxu1 %v2067_v7  ;;  %1907 = vmatprep.mubr.msk.bf16.mxu1 %vm2154_vm1, %v2153_v2 }
  0x33   : > { %1901 = vmatprep.subr.bf16.mxu1 %v2153_v2  ;;  %1920 = vmatmul.mubr.msk.bf16.vlgmr.msra.gmra.mxu0 %vm584_vm2, %v544_v8 }
  0x34   : > { %1937 = vmatprep.mubr.msk.bf16.mxu0 %vm2154_vm1, %v2153_v2 }
  0x36   : > { %1902 = vmatpush3.bf16.msra.mxu1 %v2068_v9 }
  0x37   : > { %1903 = vmatprep.subr.bf16.mxu1 %v2153_v2 }
  0x3a   : > { %1904 = vmatpush3.bf16.msra.mxu1 %v2069_v10 }
  0x3b   : > { %1905 = vmatprep.subr.bf16.mxu1 %v2153_v2 }
  0x3e   : > { %1906 = vmatpush3.bf16.msra.mxu1 %v2070_v11 }
  0x3f   : > { %1923 = vmatprep.subr.bf16.mxu1 %v2153_v2 }
  0x41   : > { %1908 = vmatmul.mubr.msk.bf16.vlgmr.msra.gmra.mxu1 %vm584_vm2, %v544_v8 }
  0x42   : > { %1925 = vmatprep.mubr.msk.bf16.mxu1 %vm2154_vm1, %v2153_v2 }
  0xf1   : > { %v622_v21 = vpop.f32.mrf.mxu1 }
  0xf2   : > { %v623_v22 = vadd.f32 %v622_v21, %v559_v19 }
  0xf3   : > { %v1897_v23 = vpop.f32.mrf.mxu1  ;;  %v774_v53 = vpop.f32.mrf.mxu0 }
  0xf4   : > { %v780_v24 = vmul.f32 0.25, %v623_v22  ;;  %v2386_v57 = vadd.f32 %v774_v53, %v715_v54 }
  0xf5   : > { %v625_v25 = vpop.f32.mrf.mxu1  ;;  %v1921_v55 = vpop.f32.mrf.mxu0 }
  0xf6   : > { %782 = vrot.lane.b32.xlu1 %v780_v24, %s2155_s2  ;;  %v791_v36 = vpack.c.bf16 %v780_v24, %v780_v24  ;;  %v819_v59 = vpack.c.bf16 %v2386_v57, %v2386_v57 }
  0xf7   : > { %v1898_v26 = vpop.f32.mrf.mxu1  ;;  %v777_v56 = vpop.f32.mrf.mxu0 }
  0xf8   : > { %v1069_v60 = vsel %vm1067_vm4, %v819_v59, 0 }
  0xf9   : > { %v1922_v58 = vpop.f32.mrf.mxu0 }
 0x101   : > { %v698_v29 = vpop.f32.mrf.mxu1 }
 0x102   : > { %v699_v30 = vadd.f32 %v698_v29, %v639_v28 }
 0x103   : > { %v1909_v31 = vpop.f32.mrf.mxu1 }
 0x104   : > { %802 = vrot.lane.b32.xlu1 %v699_v30, %s2156_s3  ;;  %796 = vrot.lane.b32.xlu0 %v699_v30, %s2155_s2  ;;  %v805_v32 = vpack.c.bf16 %v699_v30, %v699_v30 }
 0x105   : > { %v701_v33 = vpop.f32.mrf.mxu1 }
 0x106   : > { %v835_v34 = vsel %vm830_vm3, %v805_v32, 0 }
 0x107   : > { %v1910_v35 = vpop.f32.mrf.mxu1  ;;  %1924 = vmatpush3.bf16.xpose.msra.mxu1 %v835_v34 }
 0x108   : > { %788 = vrot.lane.b32.xlu1 %v780_v24, %s2156_s3  ;;  %799 = vrot.lane.b32.xlu0 %v699_v30, %s2157_s13 }
 0x109   : > { %1929 = vmatprep.subr.bf16.mxu1 %v2153_v2 }
 0x10c   : > { %785 = vrot.lane.b32.xlu0 %v780_v24, %s2157_s13 }
 0x10e   : > { %1926 = vmatmul.mubr.msk.bf16.vlgmr.msra.gmra.mxu1 %vm830_vm3, %v791_v36 }
 0x10f   : > { %1931 = vmatprep.mubr.msk.bf16.mxu1 %vm2154_vm1, %v2153_v2 }
 0x168   : > { %v783_v37 = vpop.permute.xlu1 %782 }
 0x169   : > { %v792_v46 = vpack.c.bf16 %v783_v37, %v783_v37 }
 0x176   : > { %v797_v38 = vpop.permute.xlu0 %796  ;;  %v803_v41 = vpop.permute.xlu1 %802 }
 0x177   : > { %v806_v39 = vpack.c.bf16 %v797_v38, %v797_v38  ;;  %v808_v44 = vpack.c.bf16 %v803_v41, %v803_v41 }
 0x179   : > { %v881_v40 = vsel %vm830_vm3, %v806_v39, 0  ;;  %v973_v48 = vsel %vm830_vm3, %v808_v44, 0 }
 0x17a   : > { %v800_v42 = vpop.permute.xlu0 %799  ;;  %1930 = vmatpush3.bf16.xpose.msra.mxu1 %v881_v40  ;;  %v789_v50 = vpop.permute.xlu1 %788 }
 0x17b   : > { %v807_v43 = vpack.c.bf16 %v800_v42, %v800_v42  ;;  %1941 = vmatprep.subr.bf16.mxu1 %v2153_v2  ;;  %v794_v51 = vpack.c.bf16 %v789_v50, %v789_v50 }
 0x17d   : > { %v927_v45 = vsel %vm830_vm3, %v807_v43, 0 }
 0x17e   : > { %1936 = vmatpush3.bf16.xpose.msra.mxu0 %v927_v45  ;;  %v786_v47 = vpop.permute.xlu0 %785 }
 0x17f   : > { %1947 = vmatprep.subr.bf16.mxu0 %v2153_v2  ;;  %v793_v49 = vpack.c.bf16 %v786_v47, %v786_v47 }
 0x181   : > { %1932 = vmatmul.mubr.msk.bf16.vlgmr.msra.gmra.mxu1 %vm830_vm3, %v792_v46 }
 0x182   : > { %1942 = vmatpush3.bf16.xpose.msra.mxu1 %v973_v48  ;;  %1943 = vmatprep.mubr.msk.bf16.mxu1 %vm2154_vm1, %v2153_v2 }
 0x183   : > { %1953 = vmatprep.subr.bf16.mxu1 %v2153_v2 }
 0x185   : > { %1938 = vmatmul.mubr.msk.bf16.vlgmr.msra.gmra.mxu0 %vm830_vm3, %v793_v49 }
 0x186   : > { %1949 = vmatprep.mubr.msk.bf16.mxu0 %vm2154_vm1, %v2153_v2  ;;  %1948 = vmatpush3.bf16.msra.mxu0 %v1069_v60 }
 0x187   : > { %1959 = vmatprep.subr.bf16.mxu0 %v2153_v2 }
 0x189   : > { %1944 = vmatmul.mubr.msk.bf16.vlgmr.msra.gmra.mxu1 %vm830_vm3, %v794_v51 }
 0x18a   : > { %1955 = vmatprep.mubr.msk.bf16.mxu1 %vm2154_vm1, %v2153_v2 }
 0x1ce   : > { %v871_v62 = vpop.f32.mrf.mxu1 }
 0x1cf   : > { %v872_v63 = vadd.f32 %v1799_v61, %v871_v62 }
 0x1d0   : > { %v1927_v0 = vpop.f32.mrf.mxu1 }
 0x1d1   : > { %v1016_v1 = vsel %vm1015_vm5, %v872_v63, -inf }
 0x1d2   : > { %1017 = vmax.xlane.f32.xlu0 %v1016_v1  ;;  %v874_v3 = vpop.f32.mrf.mxu1 }
 0x1d4   : > { %v1928_v4 = vpop.f32.mrf.mxu1 }
 0x241   : > { %v917_v5 = vpop.f32.mrf.mxu1 }
 0x242   : > { %v918_v7 = vadd.f32 %v1799_v61, %v917_v5 }
 0x243   : > { %v1933_v8 = vpop.f32.mrf.mxu1 }
 0x244   : > { %v1019_v9 = vsel %vm1015_vm5, %v918_v7, -inf }
 0x245   : > { %v963_v10 = vpop.f32.mrf.mxu0  ;;  %1020 = vmax.xlane.f32.xlu1 %v1019_v9  ;;  %v920_v11 = vpop.f32.mrf.mxu1  ;;  %v2075_v9 = vld [vmem:[%s2279_s25 + $0x18] sm:$0xff]  }
 0x246   : > { %v964_v12 = vadd.f32 %v1799_v61, %v963_v10 }
 0x247   : > { %v1934_v13 = vpop.f32.mrf.mxu1  ;;  %v1939_v15 = vpop.f32.mrf.mxu0 }
 0x248   : > { %v1022_v16 = vsel %vm1015_vm5, %v964_v12, -inf  ;;  %v2076_v15 = vld [vmem:[%s2279_s25 + $0x10] sm:$0xff]  }
 0x249   : > { %v966_v18 = vpop.f32.mrf.mxu0  ;;  %1023 = vmax.xlane.f32.xlu0 %v1022_v16  ;;  %v1009_v19 = vpop.f32.mrf.mxu1  ;;  %v2077_v16 = vld [vmem:[%s2279_s25 + $0x8] sm:$0xff]  }
 0x24a   : > { %v1010_v20 = vadd.f32 %v1799_v61, %v1009_v19  ;;  %v2078_v18 = vld [vmem:[%s2279_s25] sm:$0xff]  }
 0x24b   : > { %v1940_v21 = vpop.f32.mrf.mxu0  ;;  %v1945_v22 = vpop.f32.mrf.mxu1 }
 0x24c   : > { %v1025_v23 = vsel %vm1015_vm5, %v1010_v20, -inf }
 0x24d   : > { %1026 = vmax.xlane.f32.xlu0 %v1025_v23  ;;  %v1012_v24 = vpop.f32.mrf.mxu1 }
 0x24f   : > { %v1946_v25 = vpop.f32.mrf.mxu1 }
 0x256   : > { %810 = vrot.lane.b32.xlu1 %v2386_v57, %s2155_s2 }
 0x25b   : > { %v1018_v26 = vpop.xlane.xlu0 %1017 }
 0x25c   : > { %v1028_v27 = vsub.f32 %v872_v63, %v1018_v26 }
 0x25e   : > { %v1032_v28 = vmul.f32 1.442695, %v1028_v27 }
 0x260   : > { %2091 = vpow2.f32 %v1032_v28 }
 0x26d   : > { %v2092_v29 = vpop.eup %2091 }
 0x26e   : > { %v1040_v30 = vsel %vm1015_vm5, %v2092_v29, 0.0 }
 0x27a   : > { %1041 = vadd.xlane.f32.xlu1 %v1040_v30 }
 0x2ce   : > { %v1021_v31 = vpop.xlane.xlu1 %1020 }
 0x2cf   : > { %v1029_v32 = vsub.f32 %v918_v7, %v1021_v31 }
 0x2d1   : > { %v1034_v33 = vmul.f32 1.442695, %v1029_v32 }
 0x2d2   : > { %v1024_v34 = vpop.xlane.xlu0 %1023  ;;  %v811_v35 = vpop.permute.xlu1 %810 }
 0x2d3   : > { %2093 = vpow2.f32 %v1034_v33  ;;  %v1030_v36 = vsub.f32 %v964_v12, %v1024_v34  ;;  %v820_v37 = vpack.c.bf16 %v811_v35, %v811_v35 }
 0x2d5   : > { %v1036_v38 = vmul.f32 1.442695, %v1030_v36  ;;  %v1115_v39 = vsel %vm1067_vm4, %v820_v37, 0 }
 0x2d6   : > { %1954 = vmatpush3.bf16.msra.mxu1 %v1115_v39  ;;  %v1027_v40 = vpop.xlane.xlu0 %1026 }
 0x2d7   : > { %2095 = vpow2.f32 %v1036_v38  ;;  %v1031_v41 = vsub.f32 %v1010_v20, %v1027_v40  ;;  %1965 = vmatprep.subr.bf16.mxu1 %v2153_v2  ;;  %v1277_v38 = vsub.s32 3, %v2340_v14 }
 0x2d9   : > { %v1038_v42 = vmul.f32 1.442695, %v1031_v41  ;;  %v1278_v39 = vrot.slane %v2345_v17, %v1277_v38 }
 0x2db   : > { %2097 = vpow2.f32 %v1038_v42 }
 0x2e0   : > { %v2094_v43 = vpop.eup %2093 }
 0x2e1   : > { %v1043_v44 = vsel %vm1015_vm5, %v2094_v43, 0.0 }
 0x2e2   : > { %1044 = vadd.xlane.f32.xlu0 %v1043_v44 }
 0x2e4   : > { %v2096_v45 = vpop.eup %2095 }
 0x2e5   : > { %v1046_v46 = vsel %vm1015_vm5, %v2096_v45, 0.0 }
 0x2e6   : > { %1047 = vadd.xlane.f32.xlu1 %v1046_v46 }
 0x2e8   : > { %v2098_v47 = vpop.eup %2097 }
 0x2e9   : > { %v1049_v48 = vsel %vm1015_vm5, %v2098_v47, 0.0 }
 0x2ea   : > { %1050 = vadd.xlane.f32.xlu0 %v1049_v48 }
 0x2f7   : > { %816 = vrot.lane.b32.xlu1 %v2386_v57, %s2156_s3 }
 0x300   : > { %813 = vrot.lane.b32.xlu0 %v2386_v57, %s2157_s13 }
 0x303   : > { %v1042_v49 = vpop.xlane.xlu1 %1041 }
 0x304   : > { %2099 = vrcp.f32 %v1042_v49 }
 0x311   : > { %v2100_v50 = vpop.eup %2099 }
 0x312   : > { %v1056_v51 = vmul.f32 %v2100_v50, %v2092_v29 }
 0x314   : > { %v1060_v52 = vpack.c.bf16 %v1056_v51, %v1056_v51 }
 0x316   : > { %1950 = vmatmul.mubr.msk.bf16.vlgmr.msra.gmra.mxu0 %vm1015_vm5, %v1060_v52  ;;  %v2079_v52 = vld [vmem:[%s2284_s29 + $0x18] sm:$0xff]  }
 0x317   : > { %1961 = vmatprep.mubr.msk.bf16.mxu0 %vm2154_vm1, %v2153_v2 }
 0x36b   : > { %v1045_v53 = vpop.xlane.xlu0 %1044 }
 0x36c   : > { %2101 = vrcp.f32 %v1045_v53  ;;  %v2080_v53 = vld [vmem:[%s2284_s29 + $0x10] sm:$0xff]  }
 0x36f   : > { %v1048_v54 = vpop.xlane.xlu1 %1047 }
 0x370   : > { %2103 = vrcp.f32 %v1048_v54  ;;  %v2082_v54 = vld [vmem:[%s2284_s29] sm:$0xff]  }
 0x373   : > { %v1051_v55 = vpop.xlane.xlu0 %1050  ;;  %v817_v56 = vpop.permute.xlu1 %816 }
 0x374   : > { %2105 = vrcp.f32 %v1051_v55  ;;  %v822_v60 = vpack.c.bf16 %v817_v56, %v817_v56 }
 0x376   : > { %v1207_v1 = vsel %vm1067_vm4, %v822_v60, 0 }
 0x377   : > { %v814_v58 = vpop.permute.xlu0 %813 }
 0x378   : > { %v821_v59 = vpack.c.bf16 %v814_v58, %v814_v58 }
 0x379   : > { %v2102_v57 = vpop.eup %2101 }
 0x37a   : > { %v1161_v61 = vsel %vm1067_vm4, %v821_v59, 0  ;;  %v1057_v62 = vmul.f32 %v2102_v57, %v2094_v43  ;;  %v1363_v59 = vsub.s32 4, %v2340_v14  ;;  %v1368_v57 = vsub.s32 5, %v2340_v14 }
 0x37b   : > { %1960 = vmatpush3.bf16.msra.mxu0 %v1161_v61 }
 0x37c   : > { %v1061_v63 = vpack.c.bf16 %v1057_v62, %v1057_v62  ;;  %1971 = vmatprep.subr.bf16.mxu0 %v2153_v2  ;;  %v1364_v60 = vrot.slane %v2345_v17, %v1363_v59 }
 0x37d   : > { %v2104_v0 = vpop.eup %2103 }
 0x37e   : > { %1956 = vmatmul.mubr.msk.bf16.vlgmr.msra.gmra.mxu1 %vm1015_vm5, %v1061_v63  ;;  %v1058_v3 = vmul.f32 %v2104_v0, %v2096_v45  ;;  %v1369_v63 = vrot.slane %v2345_v17, %v1368_v57 }
 0x37f   : > { %1966 = vmatpush3.bf16.msra.mxu1 %v1207_v1  ;;  %1967 = vmatprep.mubr.msk.bf16.mxu1 %vm2154_vm1, %v2153_v2 }
 0x380   : > { %v1062_v4 = vpack.c.bf16 %v1058_v3, %v1058_v3  ;;  %1983 = vmatprep.subr.bf16.mxu1 %v2153_v2 }
 0x381   : > { %v2106_v5 = vpop.eup %2105 }
 0x382   : > { %1962 = vmatmul.mubr.msk.bf16.vlgmr.msra.gmra.mxu0 %vm1015_vm5, %v1062_v4  ;;  %v1059_v7 = vmul.f32 %v2106_v5, %v2098_v47  ;;  %v2083_v4 = vld [vmem:[%s2290_s12 + $0x38] sm:$0xff]   ;;  %v2084_v5 = vld [vmem:[%s2290_s12 + $0x30] sm:$0xff]  }
 0x383   : > { %1979 = vmatprep.mubr.msk.bf16.mxu0 %vm2154_vm1, %v2153_v2  ;;  %1972 = vmatpush3.bf16.msra.mxu0 %v2075_v9  ;;  %v2087_v9 = vld [vmem:[%s2290_s12 + $0x18] sm:$0xff]  }
 0x384   : > { %v1063_v8 = vpack.c.bf16 %v1059_v7, %v1059_v7  ;;  %1973 = vmatprep.subr.bf16.mxu0 %v2153_v2  ;;  %v2085_v7 = vld [vmem:[%s2290_s12 + $0x28] sm:$0xff]  }
 0x386   : > { %1968 = vmatmul.mubr.msk.bf16.vlgmr.msra.gmra.mxu1 %vm1015_vm5, %v1063_v8  ;;  %v2086_v8 = vld [vmem:[%s2290_s12 + $0x20] sm:$0xff]  }
 0x387   : > { %1991 = vmatprep.mubr.msk.bf16.mxu1 %vm2154_vm1, %v2153_v2  ;;  %1974 = vmatpush3.bf16.msra.mxu0 %v2076_v15 }
 0x388   : > { %1975 = vmatprep.subr.bf16.mxu0 %v2153_v2  ;;  %1984 = vmatpush3.bf16.msra.mxu1 %v2079_v52 }
 0x389   : > { %1985 = vmatprep.subr.bf16.mxu1 %v2153_v2 }
 0x38b   : > { %1976 = vmatpush3.bf16.msra.mxu0 %v2077_v16 }
 0x38c   : > { %1977 = vmatprep.subr.bf16.mxu0 %v2153_v2  ;;  %1986 = vmatpush3.bf16.msra.mxu1 %v2080_v53 }
 0x38d   : > { %1987 = vmatprep.subr.bf16.mxu1 %v2153_v2 }
 0x38f   : > { %1978 = vmatpush3.bf16.msra.mxu0 %v2078_v18 }
 0x390   : > { %1995 = vmatprep.subr.bf16.mxu0 %v2153_v2 }
 0x3d6   : > { %v1105_v10 = vpop.f32.mrf.mxu0 }
 0x3d8   : > { %v1951_v11 = vpop.f32.mrf.mxu0 }
 0x3d9   : > { %v2089_v11 = vld [vmem:[%s2290_s12 + $0x8] sm:$0xff]  }
 0x3da   : > { %v1108_v12 = vpop.f32.mrf.mxu0 }
 0x3db   : > { %v2090_v12 = vld [vmem:[%s2290_s12] sm:$0xff]  }
 0x3dc   : > { %v1952_v13 = vpop.f32.mrf.mxu0 }
 0x3dd   : > { %v1813_v13 = vld [vmem:[%s530_s5] ss:$0 sm:$0xff] }
 0x43e   : > { %v1151_v19 = vpop.f32.mrf.mxu1 }
 0x43f   : > { %1250 = vrot.lane.b32.xlu1 %v1151_v19, %s2158_s14 }
 0x440   : > { %v1957_v20 = vpop.f32.mrf.mxu1 }
 0x442   : > { %v1154_v21 = vpop.f32.mrf.mxu1  ;;  %v1197_v22 = vpop.f32.mrf.mxu0 }
 0x443   : > { %1254 = vrot.lane.b32.xlu0 %v1197_v22, %s2159_s24 }
 0x444   : > { %v1958_v23 = vpop.f32.mrf.mxu1  ;;  %v1963_v24 = vpop.f32.mrf.mxu0 }
 0x446   : > { %v1200_v25 = vpop.f32.mrf.mxu0  ;;  %v1243_v26 = vpop.f32.mrf.mxu1 }
 0x447   : > { %1258 = vrot.lane.b32.xlu1 %v1243_v26, %s2160_s27 }
 0x448   : > { %v1964_v27 = vpop.f32.mrf.mxu0  ;;  %v1969_v28 = vpop.f32.mrf.mxu1 }
 0x44a   : > { %v1246_v29 = vpop.f32.mrf.mxu1 }
 0x44c   : > { %v1970_v30 = vpop.f32.mrf.mxu1 }
 0x44d   : > { %v1481_v30 = vsub.s32 6, %v2340_v14 }
 0x4b1   : > { %v1251_v31 = vpop.permute.xlu1 %1250 }
 0x4b2   : > { %v1261_v33 = vsel %vm830_vm3, %v1105_v10, %v1251_v31  ;;  %v2088_v10 = vld [vmem:[%s2290_s12 + $0x10] sm:$0xff]   ;;  %v1482_v31 = vrot.slane %v2345_v17, %v1481_v30 }
 0x4b5   : > { %v1255_v32 = vpop.permute.xlu0 %1254 }
 0x4b6   : > { %v1263_v34 = vsel %vm1262_vm6, %v1261_v33, %v1255_v32 }
 0x4b9   : > { %v1259_v35 = vpop.permute.xlu1 %1258 }
 0x4ba   : > { %v1265_v36 = vsel %vm1264_vm7, %v1263_v34, %v1259_v35 }
 0x4bb   : > { %v1266_v37 = vpack.c.bf16 %v1265_v36, %v1265_v36 }
 0x4bd   : > { %1980 = vmatmul.mubr.msk.bf16.vlgmr.msra.gmra.mxu0 %vm584_vm2, %v1266_v37 }
 0x4be   : > { %2011 = vmatprep.mubr.msk.bf16.mxu0 %vm2154_vm1, %v2153_v2  ;;  %1996 = vmatpush3.bf16.msra.mxu0 %v2083_v4 }
 0x4bf   : > { %1997 = vmatprep.subr.bf16.mxu0 %v2153_v2 }
 0x4c2   : > { %1998 = vmatpush3.bf16.msra.mxu0 %v2084_v5 }
 0x4c3   : > { %1999 = vmatprep.subr.bf16.mxu0 %v2153_v2 }
 0x4c6   : > { %2000 = vmatpush3.bf16.msra.mxu0 %v2085_v7 }
 0x4c7   : > { %2001 = vmatprep.subr.bf16.mxu0 %v2153_v2 }
 0x4ca   : > { %2002 = vmatpush3.bf16.msra.mxu0 %v2086_v8 }
 0x4cb   : > { %2003 = vmatprep.subr.bf16.mxu0 %v2153_v2 }
 0x4ce   : > { %2004 = vmatpush3.bf16.msra.mxu0 %v2087_v9 }
 0x4cf   : > { %2005 = vmatprep.subr.bf16.mxu0 %v2153_v2 }
 0x4d2   : > { %2006 = vmatpush3.bf16.msra.mxu0 %v2088_v10 }
 0x4d3   : > { %2007 = vmatprep.subr.bf16.mxu0 %v2153_v2 }
 0x4d6   : > { %2008 = vmatpush3.bf16.msra.mxu0 %v2089_v11 }
 0x4d7   : > { %2009 = vmatprep.subr.bf16.mxu0 %v2153_v2 }
 0x4da   : > { %2010 = vmatpush3.bf16.msra.mxu0 %v2090_v12 }
 0x57d   : > { %v1340_v40 = vpop.f32.mrf.mxu0 }
 0x57e   : > { %v1341_v41 = vadd.f32 %v1340_v40, %v1278_v39 }
 0x57f   : > { %v1981_v42 = vpop.f32.mrf.mxu0 }
 0x580   : > { %v1346_v43 = vadd.f32 %v1341_v41, %v2318_v6  ;;  %v2081_v6 = vld [vmem:[%s2284_s29 + $0x8] sm:$0xff]  }
 0x581   : > { %v1343_v44 = vpop.f32.mrf.mxu0  ;;  %1988 = vmatpush3.bf16.msra.mxu1 %v2081_v6 }
 0x582   : > { %v1347_v45 = vsel %vm584_vm2, %v1346_v43, 0.0  ;;  %1989 = vmatprep.subr.bf16.mxu1 %v2153_v2 }
 0x583   : > { %1348 = vadd.xlane.f32.xlu0 %v1347_v45  ;;  %v1982_v46 = vpop.f32.mrf.mxu0 }
 0x585   : > { %1990 = vmatpush3.bf16.msra.mxu1 %v2082_v54 }
 0x60c   : > { %v1349_v47 = vpop.xlane.xlu0 %1348 }
 0x60d   : > { %v1351_v48 = vmul.f32 0.015625, %v1349_v47  ;;  %v1587_v47 = vsub.s32 7, %v2340_v14 }
 0x60f   : > { %v1352_v49 = vsub.f32 %v1346_v43, %v1351_v48  ;;  %v1588_v48 = vrot.slane %v2345_v17, %v1587_v47 }
 0x611   : > { %v1353_v50 = vmul.f32 %v1352_v49, %v1352_v49 }
 0x613   : > { %v1354_v51 = vsel %vm584_vm2, %v1353_v50, 0.0 }
 0x614   : > { %1355 = vadd.xlane.f32.xlu1 %v1354_v51  ;;  %v1827_v51 = vld [vmem:[%s2296_s4 + $0x8] ss:$0 sm:$0xff] }
 0x69d   : > { %v1356_v55 = vpop.xlane.xlu1 %1355 }
 0x69e   : > { %v1357_v56 = vmul.f32 0.015625, %v1356_v55 }
 0x6a0   : > { %v1358_v58 = vadd.f32 1e-12, %v1357_v56 }
 0x6a2   : > { %2107 = vrsqrt.f32 %v1358_v58 }
 0x6af   : > { %v2108_v61 = vpop.eup %2107 }
 0x6b0   : > { %v1360_v62 = vmul.f32 %v2108_v61, %v1352_v49 }
 0x6b2   : > { %v1365_v0 = vmul.f32 %v1364_v60, %v1360_v62 }
 0x6b4   : > { %v1370_v1 = vadd.f32 %v1369_v63, %v1365_v0 }
 0x6b6   : > { %v1371_v3 = vpack.c.bf16 %v1370_v1, %v1370_v1 }
 0x6b8   : > { %1992 = vmatmul.mubr.msk.bf16.vlgmr.msra.gmra.mxu1 %vm584_vm2, %v1371_v3 }
 0x778   : > { %v1447_v15 = vpop.f32.mrf.mxu1 }
 0x779   : > { %v1448_v16 = vadd.f32 %v1813_v13, %v1447_v15 }
 0x77a   : > { %v1993_v18 = vpop.f32.mrf.mxu1 }
 0x77b   : > { %v1454_v19 = vmul.f32 0.044715, %v1448_v16  ;;  %v1453_v27 = vmul.f32 0.5, %v1448_v16 }
 0x77c   : > { %v1450_v20 = vpop.f32.mrf.mxu1 }
 0x77d   : > { %v1455_v21 = vmul.f32 %v1454_v19, %v1448_v16 }
 0x77e   : > { %v1994_v22 = vpop.f32.mrf.mxu1 }
 0x77f   : > { %v1456_v23 = vmul.f32 %v1455_v21, %v1448_v16 }
 0x781   : > { %v1457_v24 = vadd.f32 %v1456_v23, %v1448_v16 }
 0x783   : > { %v1458_v25 = vmul.f32 0.7978846, %v1457_v24 }
 0x785   : > { %2109 = vtanh.f32 %v1458_v25 }
 0x792   : > { %v2110_v26 = vpop.eup %2109 }
 0x793   : > { %v1460_v2 = vadd.f32 1.0, %v2110_v26 }
 0x795   : > { %v1461_v28 = vmul.f32 %v1460_v2, %v1453_v27 }
 0x797   : > { %v1462_v29 = vpack.c.bf16 %v1461_v28, %v1461_v28 }
 0x799   : > { %2012 = vmatmul.mubr.bf16.vlgmr.msra.gmra.mxu0 %v1462_v29 }
 0x859   : > { %v1565_v32 = vpop.f32.mrf.mxu0 }
 0x85a   : > { %v1566_v33 = vadd.f32 %v1565_v32, %v1482_v31 }
 0x85b   : > { %v2013_v34 = vpop.f32.mrf.mxu0 }
 0x85c   : > { %v1571_v35 = vadd.f32 %v1566_v33, %v1370_v1 }
 0x85d   : > { %v1568_v36 = vpop.f32.mrf.mxu0 }
 0x85e   : > { %v1572_v37 = vsel %vm584_vm2, %v1571_v35, 0.0 }
 0x85f   : > { %1573 = vadd.xlane.f32.xlu0 %v1572_v37  ;;  %v2014_v38 = vpop.f32.mrf.mxu0 }
 0x8e8   : > { %v1574_v39 = vpop.xlane.xlu0 %1573 }
 0x8e9   : > { %v1575_v40 = vmul.f32 0.015625, %v1574_v39 }
 0x8eb   : > { %v1576_v41 = vsub.f32 %v1571_v35, %v1575_v40 }
 0x8ed   : > { %v1577_v42 = vmul.f32 %v1576_v41, %v1576_v41 }
 0x8ef   : > { %v1578_v43 = vsel %vm584_vm2, %v1577_v42, 0.0 }
 0x8f0   : > { %1579 = vadd.xlane.f32.xlu0 %v1578_v43 }
 0x979   : > { %v1580_v44 = vpop.xlane.xlu0 %1579 }
 0x97a   : > { %v1581_v45 = vmul.f32 0.015625, %v1580_v44 }
 0x97c   : > { %v1582_v46 = vadd.f32 1e-12, %v1581_v45 }
 0x97e   : > { %2111 = vrsqrt.f32 %v1582_v46 }
 0x98b   : > { %v2112_v49 = vpop.eup %2111 }
 0x98c   : > { %v1584_v50 = vmul.f32 %v2112_v49, %v1576_v41 }
 0x98e   : > { %v1589_v52 = vmul.f32 %v1588_v48, %v1584_v50 }
 0x990   : > { %v1594_v53 = vadd.f32 %v1827_v51, %v1589_v52 }
 0x992   : > { %1595 = vst.msk [vmem:[%s2305_s28] sm:$0xff] %vm584_vm2, %v1594_v53 }
 0x993 PF: > { %s2532_s5 = sld [smem:[#allocation4_spill]] }
 0x994   : > { %s2533_s13 = sld [smem:[#allocation2_spill]] }
 0x995   : > { %s2534_s14 = sld [smem:[#allocation3_spill]] }
 0x996   : > { %s2535_s15 = sld [smem:[#allocation5_spill]] }
 0x997   : > { %s2536_s16 = sld [smem:[#allocation6_spill]] }
 0x999   : > { %s20_s17 = sadd.s32 1, %s2532_s5  }
 0x99a   : > { %p17_p8 = scmp.ge.s32.totalorder %s20_s17, 6  }
 0x99c   :  { %19 = sbr.rel (!%p17_p8) target bundleno = 6 (0x6), region = 121 }

</bundles_post_ra>
